<compile_context>
chip_gen: v7x
topology: tpu7x:2x2x1
jax: 0.10.0
libtpu: 0.0.40
codegen_flags: <defaults>
</compile_context>

<pallas_src>
import functools

import jax
import jax.numpy as jnp
from jax.experimental import pallas as pl
from jax.experimental.pallas import tpu as pltpu

CLS_PAD = 128   # lane-dense class width for the logits output


def _round_up(x, m):
    return (x + m - 1) // m * m


def _pick_tk(d):
    # Largest K tile that divides D (bounds per-step VMEM; pipeline hides DMA).
    for tk in (512, 256, 128):
        if d % tk == 0:
            return tk
    return d  # full-array block is legal even if D is not a multiple of 128


# ----------------------------------------------------------------------------
# Init-time kernel: support embedding + prototype aggregation (runs ONCE)
#   s:  (S, D)        flattened support images (bf16)
#   w:  (D, HID)      embedding weight (bf16, native width)
#   b:  (1, HID)      bias (f32)
#   oh: (S, CLS_PAD)  one-hot(labels) / class_count, zero-padded classes (f32)
# outputs:
#   pt2:  (HID, CLS_PAD)  2 * prototypes^T (distance-matmul ready)
#   psqn: (1, CLS_PAD)    -||proto_c||^2 per class
# ----------------------------------------------------------------------------
def _proto_init_kernel(s_ref, w_ref, b_ref, oh_ref, pt2_ref, psqn_ref):
    s_emb = jnp.maximum(
        jnp.dot(s_ref[...], w_ref[...], preferred_element_type=jnp.float32)
        + b_ref[...],
        0.0,
    )  # (S, HID) f32
    # protos_t[h, c] = sum_s s_emb[s, h] * onehot_norm[s, c]   -> (HID, CLS_PAD)
    pt = jax.lax.dot_general(
        s_emb, oh_ref[...],
        dimension_numbers=(((0,), (0,)), ((), ())),
        preferred_element_type=jnp.float32,
    )
    pt2_ref[...] = 2.0 * pt
    psqn_ref[...] = -jnp.sum(pt * pt, axis=0, keepdims=True)


def build_prototypes(support_flat_bf16, w_bf16, b_f32, onehot_norm_pad):
    s, d = support_flat_bf16.shape
    hid = w_bf16.shape[1]
    return pl.pallas_call(
        _proto_init_kernel,
        out_shape=(
            jax.ShapeDtypeStruct((hid, CLS_PAD), jnp.float32),
            jax.ShapeDtypeStruct((1, CLS_PAD), jnp.float32),
        ),
        grid=(1,),
        in_specs=[
            pl.BlockSpec((s, d), lambda i: (0, 0)),
            pl.BlockSpec((d, hid), lambda i: (0, 0)),
            pl.BlockSpec((1, hid), lambda i: (0, 0)),
            pl.BlockSpec((s, CLS_PAD), lambda i: (0, 0)),
        ],
        out_specs=(
            pl.BlockSpec((hid, CLS_PAD), lambda i: (0, 0)),
            pl.BlockSpec((1, CLS_PAD), lambda i: (0, 0)),
        ),
    )(support_flat_bf16, w_bf16, b_f32, onehot_norm_pad)


# ----------------------------------------------------------------------------
# Forward kernel: fused query embedding + negative squared-distance logits,
# tiled over (Q, K) with an f32 VMEM accumulator for the pre-ReLU embedding.
#   x:    (TQ, TK)  bf16 query block
#   w:    (TK, HID) bf16 weight block (index constant in Q)
#   b:    (1, HID)  f32
#   pt2:  (HID, CLS_PAD)  2 * prototypes^T (f32, cached)
#   psqn: (1, CLS_PAD)    -||proto||^2 (f32, cached)
#   o:    (TQ, CLS_PAD)   logits = 2*q@p - ||q||^2 - ||p||^2 (lane-dense)
# ----------------------------------------------------------------------------
def _fwd_kernel(x_ref, w_ref, b_ref, pt2_ref, psqn_ref, o_ref, acc_ref):
    k = pl.program_id(1)

    @pl.when(k == 0)
    def _():
        acc_ref[...] = jnp.zeros_like(acc_ref)

    acc_ref[...] += jnp.dot(
        x_ref[...], w_ref[...], preferred_element_type=jnp.float32
    )  # (TQ, HID) f32 accumulation of the embedding matmul

    @pl.when(k == pl.num_programs(1) - 1)
    def _():
        q_emb = jnp.maximum(acc_ref[...] + b_ref[...], 0.0)            # (TQ, HID)
        q_sq = jnp.sum(q_emb * q_emb, axis=-1, keepdims=True)           # (TQ, 1)
        cross = jnp.dot(q_emb, pt2_ref[...],
                        preferred_element_type=jnp.float32)             # (TQ, CLS_PAD)
        o_ref[...] = cross - q_sq + psqn_ref[...]


def proto_forward(x_bf16, w_bf16, b_f32, pt2, psqn, *, tq, tk):
    qp, d = x_bf16.shape
    hid = w_bf16.shape[1]
    nq, nk = qp // tq, d // tk
    return pl.pallas_call(
        _fwd_kernel,
        out_shape=jax.ShapeDtypeStruct((qp, CLS_PAD), jnp.float32),
        grid_spec=pltpu.PrefetchScalarGridSpec(
            num_scalar_prefetch=0,
            grid=(nq, nk),
            in_specs=[
                pl.BlockSpec((tq, tk), lambda q, k: (q, k)),
                pl.BlockSpec((tk, hid), lambda q, k: (k, 0)),   # constant over Q
                pl.BlockSpec((1, hid), lambda q, k: (0, 0)),
                pl.BlockSpec((hid, CLS_PAD), lambda q, k: (0, 0)),
                pl.BlockSpec((1, CLS_PAD), lambda q, k: (0, 0)),
            ],
            out_specs=pl.BlockSpec((tq, CLS_PAD), lambda q, k: (q, 0)),
            scratch_shapes=[pltpu.VMEM((tq, hid), jnp.float32)],
        ),
        compiler_params=pltpu.CompilerParams(
            dimension_semantics=("parallel", "arbitrary")),
    )(x_bf16, w_bf16, b_f32, pt2, psqn)


def _forward_impl(x, w_bf16, b_f32, pt2, psqn, *, num_classes):
    q = x.shape[0]
    d = w_bf16.shape[0]
    x_flat = x.reshape(q, -1).astype(jnp.bfloat16)
    # Q tile: sublane multiple of 8, capped at 128 rows per tile.
    tq = 128 if q >= 128 else _round_up(max(q, 1), 8)
    qp = _round_up(q, tq)
    if qp != q:
        x_flat = jnp.pad(x_flat, ((0, qp - q), (0, 0)))
    tk = _pick_tk(d)
    logits_pad = proto_forward(x_flat, w_bf16, b_f32, pt2, psqn, tq=tq, tk=tk)
    return logits_pad[:q, :num_classes]


# ----------------------------------------------------------------------------
# Wrapper reproducing CustomModelWrapper.forward(x)
# ----------------------------------------------------------------------------
class CustomModelWrapperPallas:
    def __init__(self, params, support_imgs, support_labels, num_classes):
        w, b = params                       # logical (D, HID), (1, HID)
        d, hid = w.shape
        assert num_classes <= CLS_PAD
        self.num_classes = num_classes

        # Native-width weights in bf16 (dominant HBM stream), f32 bias.
        self.w_bf16 = jnp.asarray(w, jnp.bfloat16)               # (D, HID)
        self.b = jnp.asarray(b, jnp.float32).reshape(1, hid)     # (1, HID)

        # fold 1/count into the one-hot (guard count==0), pad class axis.
        s = support_imgs.shape[0]
        onehot = jax.nn.one_hot(support_labels, num_classes, dtype=jnp.float32)  # (S, C)
        counts = jnp.maximum(jnp.sum(onehot, axis=0, keepdims=True), 1.0)
        onehot_norm = onehot / counts
        onehot_pad = (
            jnp.zeros((s, CLS_PAD), jnp.float32).at[:, :num_classes].set(onehot_norm)
        )

        # ONE-TIME pallas_call: support embed + prototype aggregation, cached.
        support_flat = support_imgs.reshape(s, -1).astype(jnp.bfloat16)
        self.pt2, self.psqn = build_prototypes(
            support_flat, self.w_bf16, self.b, onehot_pad
        )

        # jit so the reshape/cast/pad and the final slice fuse with the kernel.
        self._fwd = jax.jit(
            functools.partial(_forward_impl, num_classes=num_classes))

    def forward(self, x):
        # == model.forward(support_imgs, support_labels, x)
        return self._fwd(x, self.w_bf16, self.b, self.pt2, self.psqn)


if __name__ == "__main__":
    key = jax.random.PRNGKey(0)
    k_w, k_sup, k_qry = jax.random.split(key, 3)

    NUM_CLASSES = 5
    SHOTS = 2
    C, H, W = 4, 16, 16
    HID = 32
    D = C * H * W

    # deterministic synthetic parameters (no checkpoint)
    w = jax.random.normal(k_w, (D, HID), dtype=jnp.float32) * 0.02
    b = jnp.zeros((1, HID), dtype=jnp.float32)

    # support set: 5-way 2-shot, NCHW
    support_imgs = jax.random.normal(
        k_sup, (NUM_CLASSES * SHOTS, C, H, W), dtype=jnp.float32)
    support_labels = jnp.arange(NUM_CLASSES * SHOTS, dtype=jnp.int32) % NUM_CLASSES

    # query batch, NCHW
    x = jax.random.normal(k_qry, (2, C, H, W), dtype=jnp.float32)

    model = CustomModelWrapperPallas((w, b), support_imgs, support_labels, NUM_CLASSES)
    logits = model.forward(x)
    jax.block_until_ready(logits)

    assert logits.shape == (2, NUM_CLASSES)
    assert bool(jnp.all(jnp.isfinite(logits)))

    # Pure-JAX reference (same bf16-rounded inputs, f32 accumulation).
    w32 = w.astype(jnp.bfloat16).astype(jnp.float32)
    s_emb = jnp.maximum(
        support_imgs.reshape(NUM_CLASSES * SHOTS, -1)
        .astype(jnp.bfloat16).astype(jnp.float32) @ w32 + b, 0.0)
    oh = jax.nn.one_hot(support_labels, NUM_CLASSES, dtype=jnp.float32)
    protos = (oh.T @ s_emb) / jnp.maximum(oh.sum(0), 1.0)[:, None]          # (C, HID)
    q_emb = jnp.maximum(
        x.reshape(2, -1).astype(jnp.bfloat16).astype(jnp.float32) @ w32 + b, 0.0)
    ref = -jnp.sum((q_emb[:, None, :] - protos[None, :, :]) ** 2, axis=-1)   # (Q, C)
    assert bool(jnp.allclose(logits, ref, rtol=5e-2, atol=5e-2))

    print("KERNEL_OK")
</pallas_src>

<mosaic_0001>
module attributes {stable_mosaic.version = 11 : i64} {
  func.func @_proto_init_kernel(%arg0: i32, %arg1: memref<10x1024xbf16, #tpu.memory_space<vmem>>, %arg2: memref<1024x32xbf16, #tpu.memory_space<vmem>>, %arg3: memref<1x32xf32, #tpu.memory_space<vmem>>, %arg4: memref<10x128xf32, #tpu.memory_space<vmem>>, %arg5: memref<32x128xf32, #tpu.memory_space<vmem>>, %arg6: memref<1x128xf32, #tpu.memory_space<vmem>>) attributes {dimension_semantics = [#tpu.dimension_semantics<arbitrary>], iteration_bounds = array<i64: 1>, scalar_prefetch = 0 : i64, scratch_operands = 0 : i64, tpu.core_type = #tpu.core_type<tc>, window_params = [{pipeline_mode = #tpu.pipeline_mode<synchronous>, transform_indices = @transform_0, window_bounds = array<i64: 10, 1024>}, {pipeline_mode = #tpu.pipeline_mode<synchronous>, transform_indices = @transform_1, window_bounds = array<i64: 1024, 32>}, {pipeline_mode = #tpu.pipeline_mode<synchronous>, transform_indices = @transform_2, window_bounds = array<i64: 1, 32>}, {pipeline_mode = #tpu.pipeline_mode<synchronous>, transform_indices = @transform_3, window_bounds = array<i64: 10, 128>}, {pipeline_mode = #tpu.pipeline_mode<synchronous>, transform_indices = @transform_4, window_bounds = array<i64: 32, 128>}, {pipeline_mode = #tpu.pipeline_mode<synchronous>, transform_indices = @transform_5, window_bounds = array<i64: 1, 128>}]} {
    %c0 = arith.constant 0 : index
    %c0_0 = arith.constant 0 : index
    %0 = vector.load %arg1[%c0, %c0_0] : memref<10x1024xbf16, #tpu.memory_space<vmem>>, vector<10x1024xbf16>
    %c0_1 = arith.constant 0 : index
    %c0_2 = arith.constant 0 : index
    %1 = vector.load %arg2[%c0_1, %c0_2] : memref<1024x32xbf16, #tpu.memory_space<vmem>>, vector<1024x32xbf16>
    %cst = arith.constant dense<0.000000e+00> : vector<10x32xf32>
    %2 = tpu.matmul %0, %1, %cst {dimension_numbers = #tpu.dot_dimension_numbers<[1], [0], [0], [1], [0, 0, 1, 1], [], []>} : vector<10x1024xbf16>, vector<1024x32xbf16>, vector<10x32xf32> -> vector<10x32xf32>
    %c0_3 = arith.constant 0 : index
    %c0_4 = arith.constant 0 : index
    %3 = vector.load %arg3[%c0_3, %c0_4] : memref<1x32xf32, #tpu.memory_space<vmem>>, vector<1x32xf32>
    %4 = vector.broadcast %3 : vector<1x32xf32> to vector<10x32xf32>
    %5 = arith.addf %2, %4 : vector<10x32xf32>
    %cst_5 = arith.constant 0.000000e+00 : f32
    %6 = vector.broadcast %cst_5 : f32 to vector<10x32xf32>
    %7 = arith.maximumf %5, %6 : vector<10x32xf32>
    %c0_6 = arith.constant 0 : index
    %c0_7 = arith.constant 0 : index
    %8 = vector.load %arg4[%c0_6, %c0_7] : memref<10x128xf32, #tpu.memory_space<vmem>>, vector<10x128xf32>
    %cst_8 = arith.constant dense<0.000000e+00> : vector<32x128xf32>
    %9 = tpu.matmul %7, %8, %cst_8 {dimension_numbers = #tpu.dot_dimension_numbers<[0], [0], [1], [1], [0, 1, 1, 1], [], []>} : vector<10x32xf32>, vector<10x128xf32>, vector<32x128xf32> -> vector<32x128xf32>
    %cst_9 = arith.constant 2.000000e+00 : f32
    %10 = vector.broadcast %cst_9 : f32 to vector<32x128xf32>
    %11 = arith.mulf %10, %9 : vector<32x128xf32>
    %c0_10 = arith.constant 0 : index
    %c0_11 = arith.constant 0 : index
    %12 = vector.load %arg5[%c0_10, %c0_11] : memref<32x128xf32, #tpu.memory_space<vmem>>, vector<32x128xf32>
    tpu.vector_store %arg5[%c0_10, %c0_11], %11 {strides = array<i32>} : memref<32x128xf32, #tpu.memory_space<vmem>>, vector<32x128xf32>,
    %13 = arith.mulf %9, %9 : vector<32x128xf32>
    %cst_12 = arith.constant dense<0.000000e+00> : vector<128xf32>
    %14 = vector.multi_reduction <add>, %13, %cst_12 [0] : vector<32x128xf32> to vector<128xf32>
    %15 = vector.shape_cast %14 : vector<128xf32> to vector<1x128xf32>
    %cst_13 = arith.constant 0.000000e+00 : f32
    %16 = vector.broadcast %cst_13 : f32 to vector<1x128xf32>
    %17 = arith.subf %16, %15 : vector<1x128xf32>
    %c0_14 = arith.constant 0 : index
    %c0_15 = arith.constant 0 : index
    %18 = vector.load %arg6[%c0_14, %c0_15] : memref<1x128xf32, #tpu.memory_space<vmem>>, vector<1x128xf32>
    tpu.vector_store %arg6[%c0_14, %c0_15], %17 {strides = array<i32>} : memref<1x128xf32, #tpu.memory_space<vmem>>, vector<1x128xf32>,
    return
  }
  func.func @transform_0(%arg0: i32) -> (i32, i32) {
    %c0_i32 = arith.constant 0 : i32
    %c0_i32_0 = arith.constant 0 : i32
    %c0_i32_1 = arith.constant 0 : i32
    return %c0_i32, %c0_i32_0 : i32, i32
  }
  func.func @transform_1(%arg0: i32) -> (i32, i32) {
    %c0_i32 = arith.constant 0 : i32
    %c0_i32_0 = arith.constant 0 : i32
    %c0_i32_1 = arith.constant 0 : i32
    return %c0_i32, %c0_i32_0 : i32, i32
  }
  func.func @transform_2(%arg0: i32) -> (i32, i32) {
    %c0_i32 = arith.constant 0 : i32
    %c0_i32_0 = arith.constant 0 : i32
    %c0_i32_1 = arith.constant 0 : i32
    return %c0_i32, %c0_i32_0 : i32, i32
  }
  func.func @transform_3(%arg0: i32) -> (i32, i32) {
    %c0_i32 = arith.constant 0 : i32
    %c0_i32_0 = arith.constant 0 : i32
    %c0_i32_1 = arith.constant 0 : i32
    return %c0_i32, %c0_i32_0 : i32, i32
  }
  func.func @transform_4(%arg0: i32) -> (i32, i32) {
    %c0_i32 = arith.constant 0 : i32
    %c0_i32_0 = arith.constant 0 : i32
    %c0_i32_1 = arith.constant 0 : i32
    return %c0_i32, %c0_i32_0 : i32, i32
  }
  func.func @transform_5(%arg0: i32) -> (i32, i32) {
    %c0_i32 = arith.constant 0 : i32
    %c0_i32_0 = arith.constant 0 : i32
    %c0_i32_1 = arith.constant 0 : i32
    return %c0_i32, %c0_i32_0 : i32, i32
  }
}

</mosaic_0001>

<bundles_post_ra>
// kernel: tpu_custom_call.1
= control target key start
LH: loop header
LB: loop body
LE: loop exit
PB: predicated region body
PF: predicated region fallthrough
CT: control target
= control target key end

     0   :  { %11 = vsyncpa [#allocation3], 0  ;;  %s1536_s0 = inlined_call_operand.vmem [shape: bf16[10,1024], index: 0, kind: input, shape index: {}]   ;;  %s1537_s1 = inlined_call_operand.vmem [shape: bf16[1024,32], index: 1, kind: input, shape index: {}]   ;;  %s1538_s2 = inlined_call_operand.vmem [shape: f32[1,32], index: 2, kind: input, shape index: {}]   ;;  %s1539_s3 = inlined_call_operand.vmem [shape: f32[10,128], index: 3, kind: input, shape index: {}]   ;;  %s1540_s4 = inlined_call_operand.hbm [shape: f32[32,128], index: 4, kind: output, shape index: {0}]   ;;  %s1541_s5 = inlined_call_operand.hbm [shape: f32[1,128], index: 5, kind: output, shape index: {1}]  }
   0x1   :  { %v1140_v0 = vld [vmem:[%s1537_s1 + $0x40] sm:$0xff]   ;;  %v1144_v4 = vld [vmem:[%s1537_s1 + $0x48] sm:$0xff]   ;;  %v1148_v8 = vld [vmem:[%s1537_s1 + $0x50] sm:$0xff]  }
   0x2   :  { %v1141_v1 = vld [vmem:[%s1537_s1 + $0xc0] sm:$0xff]   ;;  %1022 = vmatprep.subr.bf16.mxu0 %v1140_v0  ;;  %v1145_v5 = vld [vmem:[%s1537_s1 + $0xc8] sm:$0xff]   ;;  %v1149_v9 = vld [vmem:[%s1537_s1 + $0xd0] sm:$0xff]  }
   0x3   :  { %v1142_v2 = vld [vmem:[%s1537_s1] sm:$0xff]   ;;  %1044 = vmatprep.subr.bf16.mxu1 %v1141_v1  ;;  %v1146_v6 = vld [vmem:[%s1537_s1 + $0x8] sm:$0xff]   ;;  %v1150_v10 = vld [vmem:[%s1537_s1 + $0x10] sm:$0xff]  }
   0x4   :  { %v1143_v3 = vld [vmem:[%s1537_s1 + $0x80] sm:$0xff]   ;;  %1023 = vmatpush3.bf16.msra.mxu0 %v1142_v2  ;;  %v1147_v7 = vld [vmem:[%s1537_s1 + $0x88] sm:$0xff]   ;;  %v1151_v11 = vld [vmem:[%s1537_s1 + $0x90] sm:$0xff]  }
   0x5   :  { %1045 = vmatpush3.bf16.msra.mxu1 %v1143_v3  ;;  %1024 = vmatprep.subr.bf16.mxu0 %v1144_v4  ;;  %v1152_v12 = vld [vmem:[%s1537_s1 + $0x58] sm:$0xff]   ;;  %v1156_v16 = vld [vmem:[%s1537_s1 + $0x60] sm:$0xff]   ;;  %v1160_v20 = vld [vmem:[%s1537_s1 + $0x68] sm:$0xff]  }
   0x6   :  { %1046 = vmatprep.subr.bf16.mxu1 %v1145_v5  ;;  %v1153_v13 = vld [vmem:[%s1537_s1 + $0xd8] sm:$0xff]   ;;  %v1157_v17 = vld [vmem:[%s1537_s1 + $0xe0] sm:$0xff]   ;;  %v1161_v21 = vld [vmem:[%s1537_s1 + $0xe8] sm:$0xff]  }
   0x7   :  { %v1154_v14 = vld [vmem:[%s1537_s1 + $0x18] sm:$0xff]   ;;  %v1158_v18 = vld [vmem:[%s1537_s1 + $0x20] sm:$0xff]   ;;  %v1162_v22 = vld [vmem:[%s1537_s1 + $0x28] sm:$0xff]  }
   0x8   :  { %1025 = vmatpush3.bf16.msra.mxu0 %v1146_v6  ;;  %v1155_v15 = vld [vmem:[%s1537_s1 + $0x98] sm:$0xff]   ;;  %v1159_v19 = vld [vmem:[%s1537_s1 + $0xa0] sm:$0xff]   ;;  %v1163_v23 = vld [vmem:[%s1537_s1 + $0xa8] sm:$0xff]  }
   0x9   :  { %1047 = vmatpush3.bf16.msra.mxu1 %v1147_v7  ;;  %1026 = vmatprep.subr.bf16.mxu0 %v1148_v8  ;;  %v1164_v24 = vld [vmem:[%s1537_s1 + $0x70] sm:$0xff]   ;;  %v1168_v28 = vld [vmem:[%s1537_s1 + $0x78] sm:$0xff]   ;;  %v22_v32 = vld [vmem:[%s1536_s0] sm:$0xff] }
   0xa   :  { %1048 = vmatprep.subr.bf16.mxu1 %v1149_v9  ;;  %v1165_v25 = vld [vmem:[%s1537_s1 + $0xf0] sm:$0xff]   ;;  %v1169_v29 = vld [vmem:[%s1537_s1 + $0xf8] sm:$0xff]   ;;  %v26_v33 = vld [vmem:[%s1536_s0 + $0x20] sm:$0x11] }
   0xb   :  { %v1166_v26 = vld [vmem:[%s1537_s1 + $0x30] sm:$0xff]   ;;  %v1170_v30 = vld [vmem:[%s1537_s1 + $0x38] sm:$0xff]   ;;  %v23_v34 = vld [vmem:[%s1536_s0 + $0x8] sm:$0xff]  ;;  %v945_v35 = vcombine.low %v22_v32, %v26_v33  ;;  %v946_v36 = vcombine.high %v22_v32, %v26_v33 }
   0xc   :  { %1027 = vmatpush3.bf16.msra.mxu0 %v1150_v10  ;;  %v1167_v27 = vld [vmem:[%s1537_s1 + $0xb0] sm:$0xff]   ;;  %v1171_v31 = vld [vmem:[%s1537_s1 + $0xb8] sm:$0xff]   ;;  %v27_v37 = vld [vmem:[%s1536_s0 + $0x28] sm:$0x11] }
   0xd   :  { %1049 = vmatpush3.bf16.msra.mxu1 %v1151_v11  ;;  %1028 = vmatprep.subr.bf16.mxu0 %v1152_v12  ;;  %v947_v38 = vcombine.low %v23_v34, %v27_v37  ;;  %v948_v39 = vcombine.high %v23_v34, %v27_v37  ;;  %v1172_v40 = vld [vmem:[%s1537_s1 + $0x140] sm:$0xff]   ;;  %v1176_v44 = vld [vmem:[%s1537_s1 + $0x148] sm:$0xff]   ;;  %v1180_v48 = vld [vmem:[%s1537_s1 + $0x150] sm:$0xff]  }
   0xe   :  { %1050 = vmatprep.subr.bf16.mxu1 %v1153_v13  ;;  %621 = vmatprep.mubr.bf16.mxu0 %v946_v36  ;;  %v1173_v41 = vld [vmem:[%s1537_s1 + $0x1c0] sm:$0xff]   ;;  %v1177_v45 = vld [vmem:[%s1537_s1 + $0x1c8] sm:$0xff]   ;;  %v1181_v49 = vld [vmem:[%s1537_s1 + $0x1d0] sm:$0xff]  }
   0xf   :  { %662 = vmatprep.mubr.bf16.mxu1 %v948_v39  ;;  %v1174_v42 = vld [vmem:[%s1537_s1 + $0x100] sm:$0xff]   ;;  %v1178_v46 = vld [vmem:[%s1537_s1 + $0x108] sm:$0xff]   ;;  %v1182_v50 = vld [vmem:[%s1537_s1 + $0x110] sm:$0xff]  }
  0x10   :  { %1029 = vmatpush3.bf16.msra.mxu0 %v1154_v14  ;;  %v1175_v43 = vld [vmem:[%s1537_s1 + $0x180] sm:$0xff]   ;;  %v1179_v47 = vld [vmem:[%s1537_s1 + $0x188] sm:$0xff]   ;;  %v1183_v51 = vld [vmem:[%s1537_s1 + $0x190] sm:$0xff]  }
  0x11   :  { %1051 = vmatpush3.bf16.msra.mxu1 %v1155_v15  ;;  %1030 = vmatprep.subr.bf16.mxu0 %v1156_v16  ;;  %v1184_v52 = vld [vmem:[%s1537_s1 + $0x158] sm:$0xff]   ;;  %v1188_v56 = vld [vmem:[%s1537_s1 + $0x160] sm:$0xff]   ;;  %v1192_v60 = vld [vmem:[%s1537_s1 + $0x168] sm:$0xff]  }
  0x12   :  { %1052 = vmatprep.subr.bf16.mxu1 %v1157_v17  ;;  %v1185_v53 = vld [vmem:[%s1537_s1 + $0x1d8] sm:$0xff]   ;;  %v1189_v57 = vld [vmem:[%s1537_s1 + $0x1e0] sm:$0xff]   ;;  %v1193_v61 = vld [vmem:[%s1537_s1 + $0x1e8] sm:$0xff]  }
  0x13   :  { %v1186_v54 = vld [vmem:[%s1537_s1 + $0x118] sm:$0xff]   ;;  %v1190_v58 = vld [vmem:[%s1537_s1 + $0x120] sm:$0xff]   ;;  %v1194_v62 = vld [vmem:[%s1537_s1 + $0x128] sm:$0xff]  }
  0x14   :  { %1031 = vmatpush3.bf16.msra.mxu0 %v1158_v18  ;;  %v1187_v55 = vld [vmem:[%s1537_s1 + $0x198] sm:$0xff]   ;;  %v1191_v59 = vld [vmem:[%s1537_s1 + $0x1a0] sm:$0xff]   ;;  %v1195_v63 = vld [vmem:[%s1537_s1 + $0x1a8] sm:$0xff]  }
  0x15   :  { %1053 = vmatpush3.bf16.msra.mxu1 %v1159_v19  ;;  %1032 = vmatprep.subr.bf16.mxu0 %v1160_v20  ;;  %v1196_v0 = vld [vmem:[%s1537_s1 + $0x170] sm:$0xff]   ;;  %v1200_v4 = vld [vmem:[%s1537_s1 + $0x178] sm:$0xff]  }
  0x16   :  { %1054 = vmatprep.subr.bf16.mxu1 %v1161_v21  ;;  %v1197_v1 = vld [vmem:[%s1537_s1 + $0x1f0] sm:$0xff]   ;;  %v1201_v5 = vld [vmem:[%s1537_s1 + $0x1f8] sm:$0xff]  }
  0x17   :  { %v1198_v2 = vld [vmem:[%s1537_s1 + $0x130] sm:$0xff]   ;;  %v1202_v6 = vld [vmem:[%s1537_s1 + $0x138] sm:$0xff]  }
  0x18   :  { %1033 = vmatpush3.bf16.msra.mxu0 %v1162_v22  ;;  %v1199_v3 = vld [vmem:[%s1537_s1 + $0x1b0] sm:$0xff]   ;;  %v1203_v7 = vld [vmem:[%s1537_s1 + $0x1b8] sm:$0xff]  }
  0x19   :  { %1055 = vmatpush3.bf16.msra.mxu1 %v1163_v23  ;;  %1034 = vmatprep.subr.bf16.mxu0 %v1164_v24  ;;  %v24_v8 = vld [vmem:[%s1536_s0 + $0x10] sm:$0xff]  ;;  %v25_v12 = vld [vmem:[%s1536_s0 + $0x18] sm:$0xff] }
  0x1a   :  { %1056 = vmatprep.subr.bf16.mxu1 %v1165_v25  ;;  %v28_v9 = vld [vmem:[%s1536_s0 + $0x30] sm:$0x11]  ;;  %v29_v13 = vld [vmem:[%s1536_s0 + $0x38] sm:$0x11] }
  0x1b   :  { %v949_v10 = vcombine.low %v24_v8, %v28_v9  ;;  %v950_v11 = vcombine.high %v24_v8, %v28_v9 }
  0x1c   :  { %1035 = vmatpush3.bf16.msra.mxu0 %v1166_v26 }
  0x1d   :  { %1057 = vmatpush3.bf16.msra.mxu1 %v1167_v27  ;;  %1036 = vmatprep.subr.bf16.mxu0 %v1168_v28 }
  0x1e   :  { %1058 = vmatprep.subr.bf16.mxu1 %v1169_v29 }
  0x20   :  { %1037 = vmatpush3.bf16.msra.mxu0 %v1170_v30 }
  0x21   :  { %1059 = vmatpush3.bf16.msra.mxu1 %v1171_v31  ;;  %1066 = vmatprep.subr.bf16.mxu0 %v1172_v40 }
  0x22   :  { %1088 = vmatprep.subr.bf16.mxu1 %v1173_v41 }
  0x23   :  { %622 = vmatmul.mubr.bf16.vlgmr.msra.gmra.mrb[0].mxu0 %v945_v35 }
  0x24   :  { %663 = vmatmul.mubr.bf16.vlgmr.msra.gmra.mrb[0].mxu1 %v947_v38  ;;  %1067 = vmatpush3.bf16.msra.mxu0 %v1174_v42 }
  0x25   :  { %1089 = vmatpush3.bf16.msra.mxu1 %v1175_v43  ;;  %1068 = vmatprep.subr.bf16.mxu0 %v1176_v44 }
  0x26   :  { %1090 = vmatprep.subr.bf16.mxu1 %v1177_v45 }
  0x28   :  { %1069 = vmatpush3.bf16.msra.mxu0 %v1178_v46 }
  0x29   :  { %1091 = vmatpush3.bf16.msra.mxu1 %v1179_v47  ;;  %1070 = vmatprep.subr.bf16.mxu0 %v1180_v48 }
  0x2a   :  { %1092 = vmatprep.subr.bf16.mxu1 %v1181_v49 }
  0x2c   :  { %1071 = vmatpush3.bf16.msra.mxu0 %v1182_v50 }
  0x2d   :  { %1093 = vmatpush3.bf16.msra.mxu1 %v1183_v51  ;;  %1072 = vmatprep.subr.bf16.mxu0 %v1184_v52 }
  0x2e   :  { %1094 = vmatprep.subr.bf16.mxu1 %v1185_v53 }
  0x30   :  { %1073 = vmatpush3.bf16.msra.mxu0 %v1186_v54 }
  0x31   :  { %1095 = vmatpush3.bf16.msra.mxu1 %v1187_v55  ;;  %1074 = vmatprep.subr.bf16.mxu0 %v1188_v56 }
  0x32   :  { %1096 = vmatprep.subr.bf16.mxu1 %v1189_v57 }
  0x34   :  { %1075 = vmatpush3.bf16.msra.mxu0 %v1190_v58 }
  0x35   :  { %1097 = vmatpush3.bf16.msra.mxu1 %v1191_v59  ;;  %1076 = vmatprep.subr.bf16.mxu0 %v1192_v60 }
  0x36   :  { %1098 = vmatprep.subr.bf16.mxu1 %v1193_v61 }
  0x38   :  { %1077 = vmatpush3.bf16.msra.mxu0 %v1194_v62 }
  0x39   :  { %1099 = vmatpush3.bf16.msra.mxu1 %v1195_v63  ;;  %1078 = vmatprep.subr.bf16.mxu0 %v1196_v0 }
  0x3a   :  { %1100 = vmatprep.subr.bf16.mxu1 %v1197_v1 }
  0x3c   :  { %1079 = vmatpush3.bf16.msra.mxu0 %v1198_v2 }
  0x3d   :  { %1101 = vmatpush3.bf16.msra.mxu1 %v1199_v3  ;;  %1080 = vmatprep.subr.bf16.mxu0 %v1200_v4 }
  0x3e   :  { %1102 = vmatprep.subr.bf16.mxu1 %v1201_v5 }
  0x40   :  { %1081 = vmatpush3.bf16.msra.mxu0 %v1202_v6 }
  0x41   :  { %12 = vsyncpa [#allocation5], 0  ;;  %1103 = vmatpush3.bf16.msra.mxu1 %v1203_v7  ;;  %v951_v14 = vcombine.low %v25_v12, %v29_v13  ;;  %v952_v15 = vcombine.high %v25_v12, %v29_v13  ;;  %703 = vmatprep.mubr.bf16.mxu0 %v950_v11  ;;  %v944_v18 = vld [vmem:[%s1538_s2] ss:$0 sm:$0xff]  ;;  %v756_v51 = vld [vmem:[%s1539_s3 + $0x8] sm:$0x3] }
  0x42   :  { %v755_v50 = vld [vmem:[%s1539_s3] sm:$0xff]  ;;  %vm802_vm0 = vcmask 1041408   ;;  %vm1252_vm1 = vmmov 1   ;;  %vm789_vm3 = vcmask 80896   ;;  %s1253_s3 = smov [#allocation2]  }
  0x43   :  { %744 = vmatprep.mubr.bf16.mxu1 %v952_v15  ;;  %704 = vmatmul.mubr.bf16.vlgmr.msra.gmra.mrb[4].mxu0 %v949_v10  ;;  %v1126_v52 = vpack.c.bf16 %v756_v51, %v755_v50  ;;  %vm1127_vm2 = vmpackc.low %vm802_vm0, %vm1252_vm1  ;;  %s919_s15 = sshll.u32 %s1253_s3, 4  ;;  %s920_s15 = int_to_ptr.vmem [resolvable:$true] %s919_s15 }
  0x44   :  { %745 = vmatmul.mubr.bf16.vlgmr.msra.gmra.mrb[4].mxu1 %v951_v14  ;;  %s1204_s16 = scalar_lea.vmem %s920_s15, 512  ;;  %p1209_p1 = scmp.lt.s32.totalorder %s920_s15, %s920_s15 }
  0x45   :  { %1128 = vmatprep.subr.msk.bf16.mxu0 %vm1127_vm2, %v1126_v52  ;;  %1132 = vmatprep.subr.msk.bf16.mxu1 %vm1127_vm2, %v1126_v52  ;;  %p1205_p0 = scmp.ne.s32.totalorder %s920_s15, %s1204_s16  ;;  %p1210_p2 = scmp.lt.s32.totalorder %s1204_s16, %s1204_s16 }
  0x46   :  { %1131 = vmatpush3.bf16.msk.msra.mxu0 %vm1127_vm2, %v1126_v52  ;;  %1133 = vmatpush3.bf16.msk.msra.mxu1 %vm1127_vm2, %v1126_v52 }
  0x47   :  { %p1211_p3 = por %p1210_p2, %p1209_p1 }
  0x49   :  { %p1212_p4 = pnand %p1211_p3, %p1205_p0 }
  0xf6   :  { %v1038_v16 = vpop.f32.mrb[0].mxu0 }
  0xf7   :  { %v1060_v17 = vpop.f32.mrb[0].mxu1  ;;  %v1039_v19 = vpop.f32.mrb[1].mxu0 }
  0xf8   :  { %v1040_v20 = vadd.f32 %v1039_v19, %v1038_v16  ;;  %v1061_v21 = vpop.f32.mrb[1].mxu1  ;;  %v1041_v22 = vpop.f32.mrb[2].mxu0 }
  0xf9   :  { %v1062_v23 = vadd.f32 %v1061_v21, %v1060_v17  ;;  %v1063_v24 = vpop.f32.mrb[2].mxu1  ;;  %v1042_v25 = vpop.f32.mrb[3].mxu0 }
  0xfa   :  { %v624_v26 = vadd.f32 %v1040_v20, %v944_v18  ;;  %v1043_v27 = vadd.f32 %v1042_v25, %v1041_v22  ;;  %v1064_v28 = vpop.f32.mrb[3].mxu1 }
  0xfb   :  { %v1065_v29 = vadd.f32 %v1064_v28, %v1063_v24 }
  0xfc   :  { %v665_v30 = vadd.f32 %v1062_v23, %v624_v26  ;;  %v627_v31 = vadd.f32 %v1043_v27, %v944_v18 }
  0xfe   :  { %v668_v32 = vadd.f32 %v1065_v29, %v627_v31 }
 0x116   :  { %v1082_v33 = vpop.f32.mrb[4].mxu0 }
 0x117   :  { %v1104_v34 = vpop.f32.mrb[4].mxu1  ;;  %v1083_v35 = vpop.f32.mrb[5].mxu0 }
 0x118   :  { %v1084_v36 = vadd.f32 %v1083_v35, %v1082_v33  ;;  %v1105_v37 = vpop.f32.mrb[5].mxu1  ;;  %v1085_v38 = vpop.f32.mrb[6].mxu0 }
 0x119   :  { %v1106_v39 = vadd.f32 %v1105_v37, %v1104_v34  ;;  %v1107_v40 = vpop.f32.mrb[6].mxu1  ;;  %v1086_v41 = vpop.f32.mrb[7].mxu0 }
 0x11a   :  { %v1087_v42 = vadd.f32 %v1086_v41, %v1085_v38  ;;  %v1108_v43 = vpop.f32.mrb[7].mxu1  ;;  %v706_v44 = vadd.f32 %v1084_v36, %v665_v30 }
 0x11b   :  { %v1109_v45 = vadd.f32 %v1108_v43, %v1107_v40 }
 0x11c   :  { %v709_v46 = vadd.f32 %v1087_v42, %v668_v32  ;;  %v747_v47 = vadd.f32 %v1106_v39, %v706_v44 }
 0x11e   :  { %v753_v48 = vmax.f32 %v747_v47, 0.0  ;;  %v750_v49 = vadd.f32 %v1109_v45, %v709_v46 }
 0x120   :  { %757 = vxpose.xlu0.b32.start [1/2] (short) (narrow) %v753_v48, 32  ;;  %v754_v53 = vmax.f32 %v750_v49, 0.0 }
 0x124   :  { %758 = vxpose.xlu0.b32.end [2/2] (short) (narrow) %v754_v53, 32 }
 0x1a0   :  { %v773_v54 = vpop.trf.xlu0 }
 0x1a1   :  { %1120 = vmatprep.mubr.msk.f32.mxu0 %vm789_vm3, %v773_v54 }
 0x1a4   :  { %v774_v55 = vpop.trf.xlu0 }
 0x1a5   :  { %1121 = vmatmul.mubr.msk.f32.vlgmr.msra.gmra.mrb[8].mxu0 %vm789_vm3, %v774_v55 }
 0x1a8   :  { %v775_v56 = vpop.trf.xlu0 }
 0x1a9   :  { %1123 = vmatprep.mubr.msk.f32.mxu1 %vm789_vm3, %v775_v56 }
 0x1ac   :  { %v776_v57 = vpop.trf.xlu0 }
 0x1ad   :  { %1124 = vmatmul.mubr.msk.f32.vlgmr.msra.gmra.mrb[8].mxu1 %vm789_vm3, %v776_v57 }
 0x278   :  { %v1122_v58 = vpop.f32.mrb[8].mxu0 }
 0x279   :  { %v892_v59 = vmul.f32 2.0, %v1122_v58  ;;  %v900_v60 = vmul.f32 %v1122_v58, %v1122_v58  ;;  %v872_v61 = vpop.f32.mrb[9].mxu0 }
 0x27a   :  { %v891_v62 = vmul.f32 2.0, %v872_v61  ;;  %v899_v63 = vmul.f32 %v872_v61, %v872_v61 }
 0x27b   :  { %896 = vst [vmem:[#allocation2 + $0x8] sm:$0xff] %v892_v59 }
 0x27c   :  { %895 = vst [vmem:[#allocation2] sm:$0xff] %v891_v62  ;;  %v903_v0 = vadd.f32 %v900_v60, %v899_v63 }
 0x280   :  { %v1125_v1 = vpop.f32.mrb[8].mxu1 }
 0x281   :  { %v894_v2 = vmul.f32 2.0, %v1125_v1  ;;  %v882_v3 = vpop.f32.mrb[9].mxu1  ;;  %v902_v6 = vmul.f32 %v1125_v1, %v1125_v1 }
 0x282   :  { %v893_v4 = vmul.f32 2.0, %v882_v3  ;;  %v901_v5 = vmul.f32 %v882_v3, %v882_v3 }
 0x283   :  { %898 = vst [vmem:[#allocation2 + $0x18] sm:$0xff] %v894_v2 }
 0x284   :  { %897 = vst [vmem:[#allocation2 + $0x10] sm:$0xff] %v893_v4  ;;  %v904_v7 = vadd.f32 %v903_v0, %v901_v5 }
 0x285   :  { %1215 = shalt.err (!%p1212_p4)
}
 0x286   :  { %s1216_s19 = scalar_lea.hbm %s1540_s4, 512 }
 0x287   :  { %p1217_p5 = scmp.ne.s32.totalorder %s1540_s4, %s1216_s19  ;;  %p1220_p6 = scmp.lt.u32.totalorder %s1216_s19, %s1540_s4 }
 0x289   :  { %p1222_p7 = pnand %p1220_p6, %p1217_p5 }
 0x28b   :  { %1225 = shalt.err (!%p1222_p7)
}
 0x28c   :  { %s1254_s24 = smov 128   ;;  %s1255_s25 = smov 8   ;;  %v905_v8 = vadd.f32 %v904_v7, %v902_v6 }
 0x28d   :  { %925 = dma.vmem_to_hbm [thread:$0]  %s920_s15, 512, %s1540_s4, [#allocation3], %s1254_s24, %s1254_s24, %s1255_s25  }
 0x28e   :  { %v906_v9 = vrot.slane %v905_v8, 4  ;;  %s1256_s28 = smov [#allocation4]  }
 0x28f   :  { %s932_s29 = sshll.u32 %s1256_s28, 4  ;;  %s933_s29 = int_to_ptr.vmem [resolvable:$true] %s932_s29 }
 0x290   :  { %v907_v10 = vadd.f32 %v906_v9, %v905_v8  ;;  %s1226_s30 = scalar_lea.vmem %s933_s29, 16  ;;  %s1230_s6 = scalar_lea.vmem %s933_s29, 32 }
 0x291   :  { %p1227_p8 = scmp.ne.s32.totalorder %s933_s29, %s1226_s30  ;;  %p1231_p9 = scmp.lt.s32.totalorder %s933_s29, %s933_s29 }
 0x292   :  { %v908_v11 = vrot.slane %v907_v10, 2  ;;  %p1232_p10 = scmp.lt.s32.totalorder %s1230_s6, %s1226_s30 }
 0x294   :  { %v909_v12 = vadd.f32 %v908_v11, %v907_v10  ;;  %p1233_p11 = por %p1232_p10, %p1231_p9 }
 0x296   :  { %v910_v13 = vrot.slane %v909_v12, 1  ;;  %p1234_p12 = pnand %p1233_p11, %p1227_p8 }
 0x298   :  { %v911_v14 = vadd.f32 %v910_v13, %v909_v12 }
 0x29a   :  { %v912_v15 = vsub.f32 0.0, %v911_v14 }
 0x29c   :  { %913 = vst [vmem:[#allocation4] sm:$0x1] %v912_v15 }
 0x29d   :  { %1237 = shalt.err (!%p1234_p12)
}
 0x29e   :  { %s1238_s8 = scalar_lea.hbm %s1541_s5, 16 }
 0x29f   :  { %p1239_p13 = scmp.ne.s32.totalorder %s1541_s5, %s1238_s8  ;;  %p1242_p0 = scmp.lt.u32.totalorder %s1238_s8, %s1541_s5 }
 0x2a1   :  { %p1244_p1 = pnand %p1242_p0, %p1239_p13 }
 0x2a3   :  { %1247 = shalt.err (!%p1244_p1)
}
 0x2a4   :  { %935 = dma.vmem_to_hbm [thread:$0]  %s933_s29, 16, %s1541_s5, [#allocation5]  }
 0x2a5   :  { %1248 = dma.done.wait [#allocation3], 512  }
 0x2a6   :  { %1249 = vsyncadd [#allocation3], 4294966784 }
 0x2a7   :  { %1250 = dma.done.wait [#allocation5], 16  }
 0x2a8   :  { %1251 = vsyncadd [#allocation5], 4294967280 }
 0x2a9   :  { %942 = vsyncpa [#allocation3], 1 }
 0x2aa   :  { %943 = vsyncpa [#allocation5], 1 }

</bundles_post_ra>
